<compile_context>
chip_gen: v5e
topology: v5e:2x2
jax: 0.10.0
libtpu: 0.0.40
codegen_flags: <defaults>
</compile_context>

<pallas_src>
import math
import functools

import jax
import jax.numpy as jnp
from jax import lax
from jax.experimental import pallas as pl
from jax.experimental.pallas import tpu as pltpu


def _round_up(v, a):
    return -(-v // a) * a


def _net_kernel(x_ref, w1_ref, w2_ref, o_ref, *, l):
    # x_ref:  (tb, d) storage dtype (bf16/f32), streamed batch tile
    # w1_ref: (d, m)  same storage dtype, VMEM-resident across grid steps
    # w2_ref: (1, m)  f32 projection row, sqrt(m) already folded in
    # o_ref:  (1, tb) f32 lane-dense output row for this tile
    acts = x_ref[...]
    if l > 2:
        # Chained fc1 applications (requires d == m, as in the torch module).
        # bf16 carry keeps every matmul a native MXU op; fori_loop(unroll=True)
        # bounds activation live ranges for deeper nets.
        def body(_, a):
            h = jnp.maximum(
                jnp.dot(a, w1_ref[...], preferred_element_type=jnp.float32), 0.0)
            return h.astype(x_ref.dtype)

        acts = lax.fori_loop(0, l - 2, body, acts, unroll=True)

    # Last fc1 application: native-dtype MXU matmul with f32 accumulation.
    hidden = jnp.maximum(
        jnp.dot(acts, w1_ref[...], preferred_element_type=jnp.float32), 0.0)

    # Final (m -> 1) projection on the VPU/XLU: broadcast-mul + lane reduction.
    # sqrt(m) is pre-folded into w2_ref. Result (tb,) is stored lane-dense as
    # a (1, tb) row (single XLU relayout, free in the otherwise-idle XLU slot).
    out = jnp.sum(hidden * w2_ref[...], axis=-1)          # (tb,)
    o_ref[...] = out[None, :].astype(o_ref.dtype)         # (1, tb)


def net_forward(x, w1_t, w2_row, *, l, block_b=4096):
    """Forward pass of Net.

    x:      (B, d)  activations (bf16 or f32)
    w1_t:   (d, m)  fc1 weight, pre-transposed from torch's (m, d) layout
    w2_row: (1, m)  fc2 weight row, pre-transposed and pre-scaled by sqrt(m)
    Returns (B, 1) float32.
    """
    B, d = x.shape
    d2, m = w1_t.shape
    assert d2 == d and w2_row.shape == (1, m)
    if l > 2:
        assert d == m, "chained fc1 applications require d == m (as in the torch module)"

    lane = 128
    b_lane = _round_up(B, lane)                          # min lane-dense padded batch
    tb = min(max(lane, (block_b // lane) * lane), b_lane)
    # v7x has 2 TensorCores: ensure the ("parallel",) grid has >= 2 steps when
    # the batch is large enough to split (harmless on 1-TC v5e/v6e).
    if b_lane >= 2 * lane and b_lane // tb < 2:
        tb = _round_up(pl.cdiv(b_lane, 2), lane)
    num_tiles = pl.cdiv(b_lane, tb)
    B_pad = num_tiles * tb

    if B_pad != B:
        # Zero-pad the batch so every block is full; the computation is strictly
        # row-independent, and padded rows are sliced away below.
        x = jnp.pad(x, ((0, B_pad - B), (0, 0)))

    kernel = functools.partial(_net_kernel, l=l)
    out = pl.pallas_call(
        kernel,
        out_shape=jax.ShapeDtypeStruct((1, B_pad), jnp.float32),
        grid=(num_tiles,),
        in_specs=[
            pl.BlockSpec((tb, d), lambda i: (i, 0)),   # streamed batch tiles (double-buffered)
            pl.BlockSpec((d, m), lambda i: (0, 0)),    # resident fc1 weight
            pl.BlockSpec((1, m), lambda i: (0, 0)),    # resident projection row
            # TODO(synk): for very large d/m on v7x, add pipeline_mode=pl.Buffered(1)
            # on the two constant-index weight specs and set vmem_limit_bytes.
        ],
        out_specs=pl.BlockSpec((1, tb), lambda i: (0, i)),   # lane-dense output row
        compiler_params=pltpu.CompilerParams(
            dimension_semantics=("parallel",)),        # 2-TC sharding on v7x
    )(x, w1_t, w2_row)

    return out[0, :B].reshape(B, 1)


def init_params(key, d, m, dtype=jnp.bfloat16):
    """Deterministic init mirroring torch.nn.Linear default:
    U(-1/sqrt(fan_in), 1/sqrt(fan_in)), stored pre-transposed for the kernel."""
    k1, k2 = jax.random.split(key)
    bound1 = 1.0 / math.sqrt(d)
    bound2 = 1.0 / math.sqrt(m)
    # torch fc1.weight has shape (m, d); we store its transpose (d, m), bf16 by default.
    w1_t = jax.random.uniform(k1, (d, m), jnp.float32, -bound1, bound1).astype(dtype)
    # torch fc2.weight has shape (1, m); we store its transpose (m, 1) in f32.
    w2_t = jax.random.uniform(k2, (m, 1), jnp.float32, -bound2, bound2)
    return w1_t, w2_t


def fold_output_scale(w2_t, m):
    """Fold the sqrt(m) scale from forward() into the projection row once,
    at parameter-prep time. Returns a (1, m) float32 row for the kernel."""
    return (math.sqrt(m) * w2_t.astype(jnp.float32)).reshape(1, -1)


if __name__ == "__main__":
    # Small shapes consistent with the module: d input features, m hidden, l layers.
    B, d, m, l = 256, 16, 32, 2

    key = jax.random.PRNGKey(0)
    kx, kp = jax.random.split(key)
    x = jax.random.normal(kx, (B, d), jnp.float32).astype(jnp.bfloat16)
    w1_t, w2_t = init_params(kp, d, m, dtype=jnp.bfloat16)
    w2_row = fold_output_scale(w2_t, m)

    # With B=256 the tile selection yields tb=128 -> 2 grid steps, exercising the
    # pipelined grid (and both TensorCores on v7x).
    out = net_forward(x, w1_t, w2_row, l=l)
    out = jax.block_until_ready(out)

    # Pure-JAX f32 reference of the torch forward on the same (bf16-stored) params.
    xf = x.astype(jnp.float32)
    w1f = w1_t.astype(jnp.float32)
    ref = xf
    for _ in range(l - 1):
        ref = jnp.maximum(ref @ w1f, 0.0)
    ref = math.sqrt(m) * (ref @ w2_t.astype(jnp.float32))

    assert out.shape == (B, 1)
    assert jnp.allclose(out, ref, atol=1e-3, rtol=1e-3), float(jnp.max(jnp.abs(out - ref)))

    print("KERNEL_OK")
</pallas_src>

<mosaic_0001>
module attributes {stable_mosaic.version = 11 : i64} {
  func.func @_net_kernel(%arg0: i32, %arg1: memref<128x16xbf16, #tpu.memory_space<vmem>>, %arg2: memref<16x32xbf16, #tpu.memory_space<vmem>>, %arg3: memref<1x32xf32, #tpu.memory_space<vmem>>, %arg4: memref<1x128xf32, #tpu.memory_space<vmem>>) attributes {dimension_semantics = [#tpu.dimension_semantics<parallel>], iteration_bounds = array<i64: 2>, scalar_prefetch = 0 : i64, scratch_operands = 0 : i64, tpu.core_type = #tpu.core_type<tc>, window_params = [{transform_indices = @transform_0, window_bounds = array<i64: 128, 16>}, {pipeline_mode = #tpu.pipeline_mode<synchronous>, transform_indices = @transform_1, window_bounds = array<i64: 16, 32>}, {pipeline_mode = #tpu.pipeline_mode<synchronous>, transform_indices = @transform_2, window_bounds = array<i64: 1, 32>}, {transform_indices = @transform_3, window_bounds = array<i64: 1, 128>}]} {
    %c0 = arith.constant 0 : index
    %c0_0 = arith.constant 0 : index
    %0 = vector.load %arg1[%c0, %c0_0] : memref<128x16xbf16, #tpu.memory_space<vmem>>, vector<128x16xbf16>
    %c0_1 = arith.constant 0 : index
    %c0_2 = arith.constant 0 : index
    %1 = vector.load %arg2[%c0_1, %c0_2] : memref<16x32xbf16, #tpu.memory_space<vmem>>, vector<16x32xbf16>
    %cst = arith.constant dense<0.000000e+00> : vector<128x32xf32>
    %2 = tpu.matmul %0, %1, %cst {dimension_numbers = #tpu.dot_dimension_numbers<[1], [0], [0], [1], [0, 0, 1, 1], [], []>} : vector<128x16xbf16>, vector<16x32xbf16>, vector<128x32xf32> -> vector<128x32xf32>
    %cst_3 = arith.constant 0.000000e+00 : f32
    %3 = vector.broadcast %cst_3 : f32 to vector<128x32xf32>
    %4 = arith.maximumf %2, %3 : vector<128x32xf32>
    %c0_4 = arith.constant 0 : index
    %c0_5 = arith.constant 0 : index
    %5 = vector.load %arg3[%c0_4, %c0_5] : memref<1x32xf32, #tpu.memory_space<vmem>>, vector<1x32xf32>
    %6 = vector.broadcast %5 : vector<1x32xf32> to vector<128x32xf32>
    %7 = arith.mulf %4, %6 : vector<128x32xf32>
    %cst_6 = arith.constant dense<0.000000e+00> : vector<128xf32>
    %8 = vector.multi_reduction <add>, %7, %cst_6 [1] : vector<128x32xf32> to vector<128xf32>
    %9 = vector.shape_cast %8 : vector<128xf32> to vector<1x128xf32>
    %c0_7 = arith.constant 0 : index
    %c0_8 = arith.constant 0 : index
    %10 = vector.load %arg4[%c0_7, %c0_8] : memref<1x128xf32, #tpu.memory_space<vmem>>, vector<1x128xf32>
    tpu.vector_store %arg4[%c0_7, %c0_8], %9 {strides = array<i32>} : memref<1x128xf32, #tpu.memory_space<vmem>>, vector<1x128xf32>,
    return
  }
  func.func @transform_0(%arg0: i32) -> (i32, i32) {
    %c0_i32 = arith.constant 0 : i32
    %c0_i32_0 = arith.constant 0 : i32
    return %arg0, %c0_i32 : i32, i32
  }
  func.func @transform_1(%arg0: i32) -> (i32, i32) {
    %c0_i32 = arith.constant 0 : i32
    %c0_i32_0 = arith.constant 0 : i32
    %c0_i32_1 = arith.constant 0 : i32
    return %c0_i32, %c0_i32_0 : i32, i32
  }
  func.func @transform_2(%arg0: i32) -> (i32, i32) {
    %c0_i32 = arith.constant 0 : i32
    %c0_i32_0 = arith.constant 0 : i32
    %c0_i32_1 = arith.constant 0 : i32
    return %c0_i32, %c0_i32_0 : i32, i32
  }
  func.func @transform_3(%arg0: i32) -> (i32, i32) {
    %c0_i32 = arith.constant 0 : i32
    %c0_i32_0 = arith.constant 0 : i32
    return %c0_i32, %arg0 : i32, i32
  }
}

</mosaic_0001>

<bundles_post_ra>
// kernel: tpu_custom_call.1
= control target key start
LH: loop header
LB: loop body
LE: loop exit
PB: predicated region body
PF: predicated region fallthrough
CT: control target
= control target key end

     0   :  { %8 = vsyncpa [#allocation3], 0  ;;  %s867_s0 = inlined_call_operand.vmem [shape: bf16[256,16], index: 0, kind: input, shape index: {}]   ;;  %s868_s1 = inlined_call_operand.vmem [shape: bf16[16,32], index: 1, kind: input, shape index: {}]   ;;  %s869_s2 = inlined_call_operand.vmem [shape: f32[1,32], index: 2, kind: input, shape index: {}]   ;;  %s870_s3 = inlined_call_operand.hbm [shape: f32[1,256], index: 3, kind: output, shape index: {}]  }
   0x1   :  { %10 = vsyncpa [#allocation3 + $0x1], 0  ;;  %s731_s12 = smov 0   ;;  %s733_s13 = smov 0  }
   0x2   :  { %s735_s14 = smov 0   ;;  %s737_s15 = smov 0  }
   0x3 LB: > { %s752_s16 = sadd.s32 4294967295, %s709_s15   ;;  %s543_s17 = sadd.s32 4294967294, %s709_s15   ;;  %s709_s15 = sphi %s737_s15, %s876_s15   ;;  %s705_s14 = sphi %s735_s14, %s875_s14   ;;  %s701_s13 = sphi %s733_s13, %s874_s13   ;;  %s697_s12 = sphi %s731_s12, %s873_s12  }
   0x4   : > { %s756_s18 = sadd.s32 1, %s709_s15   ;;  %s91_s19 = sadd.s32 1, %s705_s14 }
   0x5   : > { %s88_s20 = ssub.s32 %s709_s15, %s756_s18  ;;  %p101_p0 = scmp.ne.s32.totalorder %s705_s14, %s701_s13 }
   0x6   : > { %p89_p1 = scmp.eq.s32.totalorder %s88_s20, 0  ;;  %p102_p2 = scmp.eq.s32.totalorder %s752_s16, 1 }
   0x7   : > { %p107_p3 = scmp.ne.s32.totalorder %s701_s13, %s697_s12  ;;  %p108_p4 = scmp.eq.s32.totalorder %s543_s17, 1 }
   0x8   : > { %s767_s21 = scalar_select %p89_p1, %s705_s14, %s91_s19  }
   0x9   : > { %p769_p5 = por %p102_p2, %p101_p0  ;;  %p773_p6 = por %p108_p4, %p107_p3 }
   0xa   : > { %p546_p7 = scmp.ge.s32.totalorder %s709_s15, 1  ;;  %p141_p8 = scmp.lt.s32.totalorder %s709_s15, 3 }
   0xc   : > { %p142_p9 = pnand %p546_p7, %p141_p8 }
   0xd   : > { %s547_s26 = sshll.u32 (!%p142_p9), %s752_s16, 4  ;;  %s162_s6 = sand.u32 (!%p142_p9), 1, %s701_s13  }
   0xe   : > { %145 = sbr.rel (%p142_p9) target bundleno = 327 (0x147), region = 32  ;;  %p165_p10 = scmp.lt.s32.totalorder (!%p142_p9), %s547_s26, 31 }
   0xf   : > { %s484_s9 = scalar_lea.hbm (!%p142_p9), %s870_s3, %s752_s16  ;;  %s163_s10 = scalar_lea.vmem (!%p142_p9), [#allocation2], %s162_s6 }
  0x10   : > { %s486_s11 = sshll.u32 (!%p142_p9), %s163_s10, 4  ;;  %s488_s17 = sshll.u32 (!%p142_p9), %s484_s9, 4  ;;  %s487_s11 = int_to_ptr.vmem [resolvable:$true] %s486_s11  ;;  %s489_s17 = int_to_ptr.hbm [resolvable:$true] %s488_s17 }
  0x11   : > { %s476_s16 = scalar_lea.sflag (!%p142_p9), [#allocation3], %s162_s6  ;;  %s661_s19 = sshra.s32 (!%p142_p9), %s489_s17, 4  ;;  %s662_s19 = int_to_ptr.hbm [resolvable:$true] %s661_s19 }
  0x12   : > { %s663_s20 = scalar_lea.hbm (!%p142_p9), %s662_s19, 1  ;;  %p668_p0 = scmp.lt.s32.totalorder (!%p142_p9), %s662_s19, %s870_s3 }
  0x13   : > { %v603_v0 = vld [vmem:[%s868_s1] sm:$0xff]  ;;  %s878_s26 = smov (!%p165_p10, %s547_s26), 31  ;;  %vm235_vm0 = vcmask 130048   ;;  %vm345_vm1 = vcmask 261120   ;;  %vm415_vm2 = vcmask 130112   ;;  %vm419_vm3 = vcmask 195712   ;;  %p664_p11 = scmp.ne.s32.totalorder %s662_s19, %s663_s20 }
  0x14   : > { %267 = vmatpush.bf16.msra.mxu0 %v603_v0  ;;  %604 = vmatpush.bf16.msra.mxu1 %v603_v0  ;;  %s548_s27 = sshll.u32 %s878_s26, 2  ;;  %v797_v9 = vld [vmem:[%s869_s2] ss:$0 sm:$0xff]  ;;  %vm423_vm4 = vcmask 261312   ;;  %vm427_vm5 = vcmask 326912   ;;  %vm431_vm6 = vcmask 392512  }
  0x15   : > { %605 = vmatpush.bf16.msra.mxu2 %v603_v0  ;;  %606 = vmatpush.bf16.msra.mxu3 %v603_v0  ;;  %s168_s30 = scalar_lea.vmem %s867_s0, %s548_s27  ;;  %vm435_vm7 = vcmask 458112   ;;  %vm439_vm8 = vcmask 523712   ;;  %vm443_vm9 = vcmask 589312   ;;  %vm447_vm10 = vcmask 654912   ;;  %p665_p12 = pnand %p664_p11, %p769_p5 }
  0x16   : > { %v595_v1 = vld [vmem:[%s168_s30] sm:$0xff]  ;;  %v597_v2 = vld [vmem:[%s168_s30 + $0x10] sm:$0xff]  ;;  %v596_v5 = vld [vmem:[%s168_s30 + $0x8] sm:$0xff]  ;;  %vm451_vm11 = vcmask 720512   ;;  %vm455_vm12 = vcmask 786112   ;;  %vm459_vm13 = vcmask 851712  }
  0x17   : > { %v599_v3 = vld [vmem:[%s168_s30 + $0x20] sm:$0xff]  ;;  %v601_v4 = vld [vmem:[%s168_s30 + $0x30] sm:$0xff]  ;;  %585 = vmatmul.msk.bf16.vlgmr.msra.gmra.mxu0 %vm235_vm0, %v595_v1  ;;  %587 = vmatmul.msk.bf16.vlgmr.msra.gmra.mxu1 %vm235_vm0, %v597_v2  ;;  %v598_v6 = vld [vmem:[%s168_s30 + $0x18] sm:$0xff]  ;;  %vm463_vm14 = vcmask 917312   ;;  %vm467_vm15 = vcmask 982912   ;;  %p666_p13 = pneg %p665_p12  ;;  %s667_s26 = scalar_lea.hbm %s870_s3, 2 }
  0x18   : > { %589 = vmatmul.msk.bf16.vlgmr.msra.gmra.mxu2 %vm235_vm0, %v599_v3  ;;  %591 = vmatmul.msk.bf16.vlgmr.msra.gmra.mxu3 %vm235_vm0, %v601_v4  ;;  %v600_v7 = vld [vmem:[%s168_s30 + $0x28] sm:$0xff]  ;;  %v602_v8 = vld [vmem:[%s168_s30 + $0x38] sm:$0xff]  ;;  %p669_p1 = scmp.lt.s32.totalorder %s667_s26, %s663_s20 }
  0x1a   : > { %p670_p2 = por %p669_p1, %p668_p0 }
  0x1c   : > { %p671_p3 = pnand %p670_p2, %p666_p13 }
  0x27   : > { %586 = vmatmul.msk.bf16.gmra.mxu0 %vm235_vm0, %v596_v5  ;;  %588 = vmatmul.msk.bf16.gmra.mxu1 %vm235_vm0, %v598_v6 }
  0x28   : > { %590 = vmatmul.msk.bf16.gmra.mxu2 %vm235_vm0, %v600_v7  ;;  %592 = vmatmul.msk.bf16.gmra.mxu3 %vm235_vm0, %v602_v8  ;;  %vm471_vm0 = vcmask 1048512  }
  0x94   : > { %v269_v10 = vpop.f32.mrf.mxu0  ;;  %v279_v11 = vpop.f32.mrf.mxu1 }
  0x95   : > { %v309_v12 = vmax.f32 %v269_v10, 0.0  ;;  %v313_v13 = vmax.f32 %v279_v11, 0.0 }
  0x97   : > { %v333_v14 = vmul.f32 %v797_v9, %v313_v13  ;;  %v329_v15 = vmul.f32 %v797_v9, %v309_v12 }
  0x99   : > { %v358_v16 = vsel %vm345_vm1, %v333_v14, 0.0  ;;  %v346_v17 = vsel %vm345_vm1, %v329_v15, 0.0  ;;  %v410_v15 = vlaneseq }
  0x9a   : > { %359 = vadd.xlane.f32.xlu2 %v358_v16  ;;  %347 = vadd.xlane.f32.xlu0 %v346_v17 }
  0x9b   : > { %v289_v18 = vpop.f32.mrf.mxu2  ;;  %v299_v19 = vpop.f32.mrf.mxu3 }
  0x9c   : > { %v317_v20 = vmax.f32 %v289_v18, 0.0  ;;  %v271_v21 = vpop.f32.mrf.mxu0  ;;  %v281_v22 = vpop.f32.mrf.mxu1  ;;  %v321_v50 = vmax.f32 %v299_v19, 0.0  ;;  %v411_v18 = vand.u32 127, %v410_v15 }
  0x9d   : > { %v310_v23 = vmax.f32 %v271_v21, 0.0  ;;  %v314_v26 = vmax.f32 %v281_v22, 0.0 }
  0x9e   : > { %v337_v24 = vmul.f32 %v797_v9, %v317_v20  ;;  %v341_v55 = vmul.f32 %v797_v9, %v321_v50  ;;  %v413_v20 = vadd.s32 4294967288, %v411_v18  ;;  %v417_v21 = vadd.s32 4294967280, %v411_v18 }
  0x9f   : > { %v330_v25 = vmul.f32 %v797_v9, %v310_v23  ;;  %v334_v30 = vmul.f32 %v797_v9, %v314_v26  ;;  %v421_v23 = vadd.s32 4294967272, %v411_v18 }
  0xa0   : > { %v370_v27 = vsel %vm345_vm1, %v337_v24, 0.0  ;;  %v382_v62 = vsel %vm345_vm1, %v341_v55, 0.0  ;;  %v425_v24 = vadd.s32 4294967264, %v411_v18 }
  0xa1   : > { %v349_v28 = vsel %vm345_vm1, %v330_v25, 0.0  ;;  %v361_v37 = vsel %vm345_vm1, %v334_v30, 0.0  ;;  %v429_v30 = vadd.s32 4294967256, %v411_v18 }
  0xa2   : > { %371 = vadd.xlane.f32.xlu2 %v370_v27  ;;  %350 = vadd.xlane.f32.xlu0 %v349_v28 }
  0xa3   : > { %v291_v29 = vpop.f32.mrf.mxu2  ;;  %v301_v31 = vpop.f32.mrf.mxu3 }
  0xa4   : > { %v318_v32 = vmax.f32 %v291_v29, 0.0  ;;  %v274_v33 = vpop.f32.mrf.mxu0  ;;  %v284_v34 = vpop.f32.mrf.mxu1  ;;  %v322_v6 = vmax.f32 %v301_v31, 0.0 }
  0xa5   : > { %v311_v35 = vmax.f32 %v274_v33, 0.0  ;;  %v315_v39 = vmax.f32 %v284_v34, 0.0 }
  0xa6   : > { %v338_v36 = vmul.f32 %v797_v9, %v318_v32  ;;  %v342_v8 = vmul.f32 %v797_v9, %v322_v6 }
  0xa7   : > { %v331_v38 = vmul.f32 %v797_v9, %v311_v35  ;;  %v335_v43 = vmul.f32 %v797_v9, %v315_v39  ;;  %v433_v35 = vadd.s32 4294967248, %v411_v18  ;;  %v441_v39 = vadd.s32 4294967232, %v411_v18 }
  0xa8   : > { %v373_v40 = vsel %vm345_vm1, %v338_v36, 0.0  ;;  %v385_v10 = vsel %vm345_vm1, %v342_v8, 0.0 }
  0xa9   : > { %v352_v41 = vsel %vm345_vm1, %v331_v38, 0.0  ;;  %v364_v48 = vsel %vm345_vm1, %v335_v43, 0.0  ;;  %v437_v38 = vadd.s32 4294967240, %v411_v18 }
  0xaa   : > { %362 = vadd.xlane.f32.xlu2 %v361_v37  ;;  %374 = vadd.xlane.f32.xlu0 %v373_v40  ;;  %v445_v40 = vadd.s32 4294967224, %v411_v18 }
  0xab   : > { %v294_v42 = vpop.f32.mrf.mxu2  ;;  %353 = vadd.xlane.f32.xlu1 %v352_v41  ;;  %v304_v44 = vpop.f32.mrf.mxu3 }
  0xac   : > { %v319_v45 = vmax.f32 %v294_v42, 0.0  ;;  %v276_v47 = vpop.f32.mrf.mxu0  ;;  %v323_v58 = vmax.f32 %v304_v44, 0.0  ;;  %v286_v59 = vpop.f32.mrf.mxu1  ;;  %v449_v44 = vadd.s32 4294967216, %v411_v18 }
  0xad   : > { %v312_v51 = vmax.f32 %v276_v47, 0.0  ;;  %v316_v63 = vmax.f32 %v286_v59, 0.0  ;;  %v453_v47 = vadd.s32 4294967208, %v411_v18  ;;  %v465_v59 = vadd.s32 4294967184, %v411_v18 }
  0xae   : > { %v339_v46 = vmul.f32 %v797_v9, %v319_v45  ;;  %v343_v1 = vmul.f32 %v797_v9, %v323_v58  ;;  %v461_v58 = vadd.s32 4294967192, %v411_v18 }
  0xaf   : > { %v332_v56 = vmul.f32 %v797_v9, %v312_v51  ;;  %v336_v3 = vmul.f32 %v797_v9, %v316_v63 }
  0xb0   : > { %v376_v49 = vsel %vm345_vm1, %v339_v46, 0.0  ;;  %v388_v4 = vsel %vm345_vm1, %v343_v1, 0.0 }
  0xb1   : > { %v355_v0 = vsel %vm345_vm1, %v332_v56, 0.0  ;;  %v367_v7 = vsel %vm345_vm1, %v336_v3, 0.0 }
  0xb2   : > { %365 = vadd.xlane.f32.xlu0 %v364_v48 }
  0xb3   : > { %v296_v52 = vpop.f32.mrf.mxu2  ;;  %377 = vadd.xlane.f32.xlu1 %v376_v49  ;;  %v306_v54 = vpop.f32.mrf.mxu3 }
  0xb4   : > { %v320_v53 = vmax.f32 %v296_v52, 0.0  ;;  %v324_v60 = vmax.f32 %v306_v54, 0.0  ;;  %v457_v54 = vadd.s32 4294967200, %v411_v18 }
  0xb6   : > { %v340_v57 = vmul.f32 %v797_v9, %v320_v53  ;;  %v344_v2 = vmul.f32 %v797_v9, %v324_v60 }
  0xb8   : > { %v379_v61 = vsel %vm345_vm1, %v340_v57, 0.0  ;;  %v391_v5 = vsel %vm345_vm1, %v344_v2, 0.0 }
  0xb9   : > { %380 = vadd.xlane.f32.xlu2 %v379_v61 }
  0xba   : > { %383 = vadd.xlane.f32.xlu0 %v382_v62  ;;  %v469_v62 = vadd.s32 4294967176, %v411_v18 }
  0xbb   : > { %356 = vadd.xlane.f32.xlu1 %v355_v0 }
  0xc1   : > { %389 = vadd.xlane.f32.xlu2 %v388_v4 }
  0xc2   : > { %392 = vadd.xlane.f32.xlu0 %v391_v5 }
  0xc3   : > { %368 = vadd.xlane.f32.xlu1 %v367_v7 }
  0xcb   : > { %386 = vadd.xlane.f32.xlu1 %v385_v10 }
 0x10d   : > { %v348_v11 = vpop.xlane.xlu0 %347  ;;  %v360_v13 = vpop.xlane.xlu2 %359 }
 0x10e   : > { %v412_v26 = vperm.slane %v348_v11, %v411_v18  ;;  %v426_v32 = vperm.slane %v360_v13, %v425_v24 }
 0x115   : > { %v351_v12 = vpop.xlane.xlu0 %350  ;;  %v372_v17 = vpop.xlane.xlu2 %371 }
 0x116   : > { %v414_v22 = vperm.slane %v351_v12, %v413_v20  ;;  %v442_v49 = vperm.slane %v372_v17, %v441_v39 }
 0x118   : > { %v416_v29 = vsel %vm415_vm2, %v414_v22, %v412_v26 }
 0x11d   : > { %v375_v16 = vpop.xlane.xlu0 %374  ;;  %v363_v27 = vpop.xlane.xlu2 %362 }
 0x11e   : > { %v354_v14 = vpop.xlane.xlu1 %353  ;;  %v430_v37 = vperm.slane %v363_v27, %v429_v30  ;;  %v446_v51 = vperm.slane %v375_v16, %v445_v40 }
 0x11f   : > { %v418_v25 = vperm.slane %v354_v14, %v417_v21 }
 0x121   : > { %v420_v33 = vsel %vm419_vm3, %v418_v25, %v416_v29 }
 0x125   : > { %v366_v9 = vpop.xlane.xlu0 %365 }
 0x126   : > { %v378_v19 = vpop.xlane.xlu1 %377  ;;  %v434_v43 = vperm.slane %v366_v9, %v433_v35 }
 0x127   : > { %v450_v53 = vperm.slane %v378_v19, %v449_v44 }
 0x12c   : > { %v381_v41 = vpop.xlane.xlu2 %380 }
 0x12d   : > { %v384_v45 = vpop.xlane.xlu0 %383  ;;  %v454_v56 = vperm.slane %v381_v41, %v453_v47 }
 0x12e   : > { %v357_v28 = vpop.xlane.xlu1 %356  ;;  %v458_v0 = vperm.slane %v384_v45, %v457_v54 }
 0x12f   : > { %v422_v31 = vperm.slane %v357_v28, %v421_v23 }
 0x131   : > { %v424_v34 = vsel %vm423_vm4, %v422_v31, %v420_v33 }
 0x132   : > { %v428_v36 = vsel %vm427_vm5, %v426_v32, %v424_v34 }
 0x133   : > { %v432_v42 = vsel %vm431_vm6, %v430_v37, %v428_v36 }
 0x134   : > { %v436_v50 = vsel %vm435_vm7, %v434_v43, %v432_v42  ;;  %v390_v61 = vpop.xlane.xlu2 %389 }
 0x135   : > { %v393_v1 = vpop.xlane.xlu0 %392  ;;  %v466_v4 = vperm.slane %v390_v61, %v465_v59 }
 0x136   : > { %v369_v46 = vpop.xlane.xlu1 %368  ;;  %v470_v6 = vperm.slane %v393_v1, %v469_v62 }
 0x137   : > { %v438_v48 = vperm.slane %v369_v46, %v437_v38 }
 0x139   : > { %v440_v52 = vsel %vm439_vm8, %v438_v48, %v436_v50 }
 0x13a   : > { %v444_v55 = vsel %vm443_vm9, %v442_v49, %v440_v52 }
 0x13b   : > { %v448_v57 = vsel %vm447_vm10, %v446_v51, %v444_v55 }
 0x13c   : > { %v452_v60 = vsel %vm451_vm11, %v450_v53, %v448_v57 }
 0x13d   : > { %v456_v63 = vsel %vm455_vm12, %v454_v56, %v452_v60 }
 0x13e   : > { %v387_v2 = vpop.xlane.xlu1 %386  ;;  %v460_v5 = vsel %vm459_vm13, %v458_v0, %v456_v63 }
 0x13f   : > { %v462_v3 = vperm.slane %v387_v2, %v461_v58 }
 0x141   : > { %v464_v7 = vsel %vm463_vm14, %v462_v3, %v460_v5 }
 0x142   : > { %v468_v8 = vsel %vm467_vm15, %v466_v4, %v464_v7 }
 0x143   : > { %v472_v10 = vsel %vm471_vm0, %v470_v6, %v468_v8 }
 0x144   : > { %474 = vst [vmem:[%s163_s10] sm:$0x1] %v472_v10 }
 0x145   : > { %674 = shalt.err (!%p671_p3)
}
 0x146   : > { %607 = dma.vmem_to_hbm [thread:$0]  (%p769_p5), %s487_s11, 16, %s489_s17, %s476_s16  }
 0x147 PF: > { %p613_p4 = scmp.ge.s32.totalorder %s709_s15, 2  ;;  %s500_s29 = sand.u32 1, %s697_s12  }
 0x148   : > { %s501_s30 = scalar_lea.sflag [#allocation3], %s500_s29 }
 0x149   : > { %p610_p7 = pnand %p613_p4, %p773_p6 }
 0x14b   : > { %p611_p8 = pneg %p610_p7 }
 0x14d   : > { %692 = dma.done.wait (%p611_p8), %s501_s30, 16  }
 0x14e   : > { %694 = vsyncadd (%p611_p8), %s501_s30, 4294967280  ;;  %p13_p9 = scmp.ge.s32.totalorder %s756_s18, 4   ;;  %s873_s12 = smov %s701_s13 }
 0x14f   : > { %s874_s13 = smov %s705_s14  ;;  %s875_s14 = smov %s767_s21 }
 0x150   : > { %s876_s15 = smov %s756_s18  ;;  %15 = sbr.rel (!%p13_p9) target bundleno = 3 (0x3), region = 67 }
 0x155   :  { %506 = vsyncpa [#allocation3], 1 }
 0x156   :  { %508 = vsyncpa [#allocation3 + $0x1], 1 }

</bundles_post_ra>
